<compile_context>
chip_gen: v6e
topology: v6e:2x2x1
jax: 0.10.0
libtpu: 0.0.40
codegen_flags: <defaults>
</compile_context>

<pallas_src>
import functools

import jax
import jax.numpy as jnp
from jax.experimental import pallas as pl
from jax.experimental.pallas import tpu as pltpu


# ---------------- config (mirrors the PyTorch `config` object) ----------------
EMBEDDING_DIM = 32
NUM_HEADS = 4
HEAD_SIZE = 8            # EMBEDDING_DIM // NUM_HEADS
BLOCK_SIZE = 8           # seq_len == BLOCK_SIZE
BATCH = 2
DROPOUT_RATE = 0.1       # eval mode -> identity


# ---------------------------- Pallas kernel ----------------------------------
def mha_kernel(x_ref, wqkv_ref, wp_ref, bp_ref, o_ref, *,
               num_heads, head_dim, seq_len):
    """Single-invocation fused multi-head attention.

    x_ref    : (N, E)  f32     N = B*S token slab
    wqkv_ref : (H, E, 3*D) bf16  per-head [Wq*D^-0.5 | Wk | Wv] column blocks
    wp_ref   : (H*D, E) bf16   output projection
    bp_ref   : (1, E)  f32     output projection bias
    o_ref    : (N, E)  f32
    """
    H, D, S = num_heads, head_dim, seq_len
    N, E = x_ref.shape

    # bf16 MXU operand (cast once, then cheap leading-dim broadcast).
    x = x_ref[...].astype(jnp.bfloat16)                          # (N, E)
    xb = jnp.broadcast_to(x, (H, N, E))                          # (H, N, E)

    # One head-batched QKV projection (leading batch dim -> plain batched
    # dot_general).  Wq is pre-scaled by D**-0.5 so no in-kernel score scaling.
    qkv = jnp.einsum('hne,hef->hnf', xb, wqkv_ref[...],
                     preferred_element_type=jnp.float32)         # (H, N, 3D)

    # Three static lane slices replace the old 12 slices + 3 stacks.
    q = qkv[:, :, 0:D].astype(jnp.bfloat16)                      # (H, N, D)
    k = qkv[:, :, D:2 * D].astype(jnp.bfloat16)
    v = qkv[:, :, 2 * D:3 * D].astype(jnp.bfloat16)

    # Head-batched attention scores, f32 accumulation.
    s = jnp.einsum('hnd,hmd->hnm', q, k,
                   preferred_element_type=jnp.float32)           # (H, N, N)

    # Block-diagonal (per batch element) causal mask generated in-kernel:
    # only iota / shift / compare on idle VPU slots, no O(N^2) input.
    row = jax.lax.broadcasted_iota(jnp.int32, (N, N), 0)
    col = jax.lax.broadcasted_iota(jnp.int32, (N, N), 1)
    if (S & (S - 1)) == 0:                                       # S power of 2
        shift = S.bit_length() - 1
        same_batch = (row >> shift) == (col >> shift)
    else:
        same_batch = (row // S) == (col // S)
    allowed = same_batch & (col <= row)                          # causal within batch
    s = jnp.where(allowed[None], s, jnp.float32(-1e30))

    # Numerically-stable softmax, all f32 (diagonal always allowed -> no 0-row).
    m = jnp.max(s, axis=-1, keepdims=True)
    e = jnp.exp(s - m)
    denom = jnp.sum(e, axis=-1, keepdims=True)
    p = (e * pl.reciprocal(denom, approx=True)).astype(jnp.bfloat16)  # EUP recip

    # Head-batched PV matmul.
    o = jnp.einsum('hnm,hmd->hnd', p, v,
                   preferred_element_type=jnp.float32)           # (H, N, D)

    # Transpose-free concat of heads along lanes -> (N, H*D), then ONE
    # projection matmul with contraction K = H*D (replaces 4 tiny K=D matmuls
    # + cross-head sum).
    o_cat = jnp.concatenate([o[h] for h in range(H)], axis=-1)   # (N, H*D)
    y = jnp.dot(o_cat.astype(jnp.bfloat16), wp_ref[...],
                preferred_element_type=jnp.float32)              # (N, E)
    y = y + bp_ref[...]

    o_ref[...] = y.astype(o_ref.dtype)                           # single store


# ------------------------- hoisted parameter prep -----------------------------
def prepare_params(wq, wk, wv, wp_t, bp):
    """One-time constant prep (NOT in the per-call hot path).

    wq/wk/wv: (H, E, D); wp_t: (H*D, E); bp: (1, E).
    Returns head-batched bf16 QKV weight (Wq pre-scaled), bf16 Wp, f32 bias.
    """
    H, E, D = wq.shape
    scale = jnp.float32(D) ** jnp.float32(-0.5)
    wqkv = jnp.concatenate([wq * scale, wk, wv], axis=-1)        # (H, E, 3D)
    return (wqkv.astype(jnp.bfloat16),
            wp_t.astype(jnp.bfloat16),
            bp.astype(jnp.float32))


# ------------------------------- forward --------------------------------------
def _mha_forward(x, wqkv, wp_bf, bp):
    """x: (B, S, E); wqkv: (H, E, 3D) bf16; wp_bf: (H*D, E) bf16; bp: (1, E)."""
    B, S, E = x.shape
    H = wqkv.shape[0]
    D = wqkv.shape[2] // 3
    N = B * S

    x2 = x.reshape(N, E)                                         # free (row-major)

    kernel = functools.partial(mha_kernel, num_heads=H, head_dim=D, seq_len=S)
    vmem = pl.BlockSpec(memory_space=pltpu.MemorySpace.VMEM)

    # No grid: single invocation processes the whole (B*S, E) token slab —
    # right call on single-TC v5e/v6e at this size.  On v7x with larger B,
    # reintroduce grid=(B,) + dimension_semantics=("parallel",) to use both TCs.
    out = pl.pallas_call(
        kernel,
        out_shape=jax.ShapeDtypeStruct((N, E), x.dtype),
        in_specs=[vmem, vmem, vmem, vmem],
        out_specs=vmem,
    )(x2, wqkv, wp_bf, bp)
    return out.reshape(B, S, E)


mha_forward = jax.jit(_mha_forward)


# ---------------------------- pure-JAX reference ------------------------------
def reference(x, wq, wk, wv, wp_t, bp):
    H, _, D = wq.shape
    S = x.shape[1]
    scale = D ** -0.5
    mask = jnp.tril(jnp.ones((S, S), dtype=bool))
    outs = []
    for h in range(H):
        q = x @ wq[h]
        k = x @ wk[h]
        v = x @ wv[h]
        s = (q @ jnp.swapaxes(k, -1, -2)) * scale
        s = jnp.where(mask[None], s, -jnp.inf)
        p = jax.nn.softmax(s, axis=-1)
        outs.append(p @ v)
    cat = jnp.concatenate(outs, axis=-1)
    return cat @ wp_t + bp[0]


# ----------------------------------- main -------------------------------------
if __name__ == "__main__":
    key = jax.random.PRNGKey(0)
    kx, kq, kk, kv, kp, kb = jax.random.split(key, 6)

    B, S, E, H, D = BATCH, BLOCK_SIZE, EMBEDDING_DIM, NUM_HEADS, HEAD_SIZE

    x = jax.random.normal(kx, (B, S, E), dtype=jnp.float32)

    # Deterministic parameter init (PyTorch-Linear-like uniform scaling).
    bound_qkv = 1.0 / (E ** 0.5)
    wq = jax.random.uniform(kq, (H, E, D), jnp.float32, -bound_qkv, bound_qkv)
    wk = jax.random.uniform(kk, (H, E, D), jnp.float32, -bound_qkv, bound_qkv)
    wv = jax.random.uniform(kv, (H, E, D), jnp.float32, -bound_qkv, bound_qkv)

    bound_p = 1.0 / ((H * D) ** 0.5)
    wp_t = jax.random.uniform(kp, (H * D, E), jnp.float32, -bound_p, bound_p)
    bp = jax.random.uniform(kb, (1, E), jnp.float32, -bound_p, bound_p)

    # Constant prep done ONCE (hoisted out of the per-call hot path).
    wqkv_bf, wp_bf, bp_f32 = prepare_params(wq, wk, wv, wp_t, bp)

    out = mha_forward(x, wqkv_bf, wp_bf, bp_f32)
    out = jax.block_until_ready(out)

    ref = reference(x, wq, wk, wv, wp_t, bp)
    assert out.shape == (B, S, E)
    # Loosened tolerance: bf16 MXU operands + approximate EUP reciprocal.
    assert jnp.allclose(out, ref, atol=3e-2, rtol=3e-2), "mismatch vs JAX reference"

    print("KERNEL_OK")
</pallas_src>

<mosaic_0001>
module attributes {stable_mosaic.version = 11 : i64} {
  func.func @mha_kernel(%arg0: memref<16x32xf32, #tpu.memory_space<vmem>>, %arg1: memref<4x32x24xbf16, #tpu.memory_space<vmem>>, %arg2: memref<32x32xbf16, #tpu.memory_space<vmem>>, %arg3: memref<1x32xf32, #tpu.memory_space<vmem>>, %arg4: memref<16x32xf32, #tpu.memory_space<vmem>>) attributes {dimension_semantics = [], scalar_prefetch = 0 : i64, scratch_operands = 0 : i64, tpu.core_type = #tpu.core_type<tc>} {
    %c0 = arith.constant 0 : index
    %c0_0 = arith.constant 0 : index
    %0 = vector.load %arg0[%c0, %c0_0] : memref<16x32xf32, #tpu.memory_space<vmem>>, vector<16x32xf32>
    %1 = arith.truncf %0 : vector<16x32xf32> to vector<16x32xbf16>
    %2 = vector.shape_cast %1 : vector<16x32xbf16> to vector<1x16x32xbf16>
    %3 = vector.broadcast %2 : vector<1x16x32xbf16> to vector<4x16x32xbf16>
    %c0_1 = arith.constant 0 : index
    %c0_2 = arith.constant 0 : index
    %c0_3 = arith.constant 0 : index
    %4 = vector.load %arg1[%c0_1, %c0_2, %c0_3] : memref<4x32x24xbf16, #tpu.memory_space<vmem>>, vector<4x32x24xbf16>
    "tpu.trace_start"() <{level = 10 : i32, message = "hne,hef->hnf"}> : () -> ()
    %cst = arith.constant dense<0.000000e+00> : vector<4x16x24xf32>
    %5 = tpu.matmul %3, %4, %cst {dimension_numbers = #tpu.dot_dimension_numbers<[2], [1], [1], [2], [0, 0, 0, 1, 1, 2], [0], [0]>} : vector<4x16x32xbf16>, vector<4x32x24xbf16>, vector<4x16x24xf32> -> vector<4x16x24xf32>
    "tpu.trace_stop"() : () -> ()
    %6 = vector.extract_strided_slice %5 {offsets = [0, 0, 0], sizes = [4, 16, 8], strides = [1, 1, 1]} : vector<4x16x24xf32> to vector<4x16x8xf32>
    %7 = arith.truncf %6 : vector<4x16x8xf32> to vector<4x16x8xbf16>
    %8 = vector.extract_strided_slice %5 {offsets = [0, 0, 8], sizes = [4, 16, 8], strides = [1, 1, 1]} : vector<4x16x24xf32> to vector<4x16x8xf32>
    %9 = arith.truncf %8 : vector<4x16x8xf32> to vector<4x16x8xbf16>
    %10 = vector.extract_strided_slice %5 {offsets = [0, 0, 16], sizes = [4, 16, 8], strides = [1, 1, 1]} : vector<4x16x24xf32> to vector<4x16x8xf32>
    %11 = arith.truncf %10 : vector<4x16x8xf32> to vector<4x16x8xbf16>
    "tpu.trace_start"() <{level = 10 : i32, message = "hnd,hmd->hnm"}> : () -> ()
    %cst_4 = arith.constant dense<0.000000e+00> : vector<4x16x16xf32>
    %12 = tpu.matmul %7, %9, %cst_4 {dimension_numbers = #tpu.dot_dimension_numbers<[2], [2], [1], [1], [0, 0, 0, 1, 1, 1], [0], [0]>} : vector<4x16x8xbf16>, vector<4x16x8xbf16>, vector<4x16x16xf32> -> vector<4x16x16xf32>
    "tpu.trace_stop"() : () -> ()
    %13 = tpu.iota {dimensions = array<i32: 0>} : vector<16x16xi32>
    %14 = tpu.iota {dimensions = array<i32: 1>} : vector<16x16xi32>
    %c3_i32 = arith.constant 3 : i32
    %15 = vector.broadcast %c3_i32 : i32 to vector<16x16xi32>
    %16 = arith.shrsi %13, %15 : vector<16x16xi32>
    %c3_i32_5 = arith.constant 3 : i32
    %17 = vector.broadcast %c3_i32_5 : i32 to vector<16x16xi32>
    %18 = arith.shrsi %14, %17 : vector<16x16xi32>
    %19 = arith.cmpi eq, %16, %18 : vector<16x16xi32>
    %20 = arith.cmpi sle, %14, %13 : vector<16x16xi32>
    %21 = arith.andi %19, %20 : vector<16x16xi1>
    %22 = vector.shape_cast %21 : vector<16x16xi1> to vector<1x16x16xi1>
    %cst_6 = arith.constant -1.000000e+30 : f32
    %23 = vector.shape_cast %22 : vector<1x16x16xi1> to vector<1x16x16xi1>
    %24 = vector.broadcast %23 : vector<1x16x16xi1> to vector<4x16x16xi1>
    %25 = vector.broadcast %cst_6 : f32 to vector<4x16x16xf32>
    %26 = arith.select %24, %12, %25 : vector<4x16x16xi1>, vector<4x16x16xf32>
    %cst_7 = arith.constant dense<0xFF800000> : vector<4x16xf32>
    %27 = vector.multi_reduction <maximumf>, %26, %cst_7 [2] : vector<4x16x16xf32> to vector<4x16xf32>
    %28 = vector.shape_cast %27 : vector<4x16xf32> to vector<4x16x1xf32>
    %29 = vector.broadcast %28 : vector<4x16x1xf32> to vector<4x16x16xf32>
    %30 = arith.subf %26, %29 : vector<4x16x16xf32>
    %31 = math.exp %30 : vector<4x16x16xf32>
    %cst_8 = arith.constant dense<0.000000e+00> : vector<4x16xf32>
    %32 = vector.multi_reduction <add>, %31, %cst_8 [2] : vector<4x16x16xf32> to vector<4x16xf32>
    %33 = vector.shape_cast %32 : vector<4x16xf32> to vector<4x16x1xf32>
    %34 = tpu.reciprocal %33 {approx = true} : vector<4x16x1xf32> -> vector<4x16x1xf32>
    %35 = vector.broadcast %34 : vector<4x16x1xf32> to vector<4x16x16xf32>
    %36 = arith.mulf %31, %35 : vector<4x16x16xf32>
    %37 = arith.truncf %36 : vector<4x16x16xf32> to vector<4x16x16xbf16>
    "tpu.trace_start"() <{level = 10 : i32, message = "hnm,hmd->hnd"}> : () -> ()
    %cst_9 = arith.constant dense<0.000000e+00> : vector<4x16x8xf32>
    %38 = tpu.matmul %37, %11, %cst_9 {dimension_numbers = #tpu.dot_dimension_numbers<[2], [1], [1], [2], [0, 0, 0, 1, 1, 2], [0], [0]>} : vector<4x16x16xbf16>, vector<4x16x8xbf16>, vector<4x16x8xf32> -> vector<4x16x8xf32>
    "tpu.trace_stop"() : () -> ()
    %39 = vector.extract_strided_slice %38 {offsets = [0, 0, 0], sizes = [1, 16, 8], strides = [1, 1, 1]} : vector<4x16x8xf32> to vector<1x16x8xf32>
    %40 = vector.shape_cast %39 : vector<1x16x8xf32> to vector<16x8xf32>
    %41 = vector.extract_strided_slice %38 {offsets = [1, 0, 0], sizes = [1, 16, 8], strides = [1, 1, 1]} : vector<4x16x8xf32> to vector<1x16x8xf32>
    %42 = vector.shape_cast %41 : vector<1x16x8xf32> to vector<16x8xf32>
    %43 = vector.extract_strided_slice %38 {offsets = [2, 0, 0], sizes = [1, 16, 8], strides = [1, 1, 1]} : vector<4x16x8xf32> to vector<1x16x8xf32>
    %44 = vector.shape_cast %43 : vector<1x16x8xf32> to vector<16x8xf32>
    %45 = vector.extract_strided_slice %38 {offsets = [3, 0, 0], sizes = [1, 16, 8], strides = [1, 1, 1]} : vector<4x16x8xf32> to vector<1x16x8xf32>
    %46 = vector.shape_cast %45 : vector<1x16x8xf32> to vector<16x8xf32>
    %47 = tpu.concatenate %40, %42, %44, %46 in 1 : vector<16x8xf32>, vector<16x8xf32>, vector<16x8xf32>, vector<16x8xf32> -> vector<16x32xf32>
    %48 = arith.truncf %47 : vector<16x32xf32> to vector<16x32xbf16>
    %c0_10 = arith.constant 0 : index
    %c0_11 = arith.constant 0 : index
    %49 = vector.load %arg2[%c0_10, %c0_11] : memref<32x32xbf16, #tpu.memory_space<vmem>>, vector<32x32xbf16>
    %cst_12 = arith.constant dense<0.000000e+00> : vector<16x32xf32>
    %50 = tpu.matmul %48, %49, %cst_12 {dimension_numbers = #tpu.dot_dimension_numbers<[1], [0], [0], [1], [0, 0, 1, 1], [], []>} : vector<16x32xbf16>, vector<32x32xbf16>, vector<16x32xf32> -> vector<16x32xf32>
    %c0_13 = arith.constant 0 : index
    %c0_14 = arith.constant 0 : index
    %51 = vector.load %arg3[%c0_13, %c0_14] : memref<1x32xf32, #tpu.memory_space<vmem>>, vector<1x32xf32>
    %52 = vector.broadcast %51 : vector<1x32xf32> to vector<16x32xf32>
    %53 = arith.addf %50, %52 : vector<16x32xf32>
    %c0_15 = arith.constant 0 : index
    %c0_16 = arith.constant 0 : index
    %54 = vector.load %arg4[%c0_15, %c0_16] : memref<16x32xf32, #tpu.memory_space<vmem>>, vector<16x32xf32>
    tpu.vector_store %arg4[%c0_15, %c0_16], %53 {strides = array<i32>} : memref<16x32xf32, #tpu.memory_space<vmem>>, vector<16x32xf32>,
    return
  }
}

</mosaic_0001>

<bundles_post_ra>
// kernel: _mha_forward.1
= control target key start
LH: loop header
LB: loop body
LE: loop exit
PB: predicated region body
PF: predicated region fallthrough
CT: control target
= control target key end

     0   :  { %v1114_v1 = vmov 0.0   ;;  %vm1115_vm0 = vmmov 0   ;;  %vm50_vm1 = vcmask 261120   ;;  %s1323_s0 = inlined_call_operand.vmem [shape: f32[16,32], index: 0, kind: input, shape index: {}]   ;;  %s1324_s1 = inlined_call_operand.vmem [shape: bf16[4,32,24], index: 1, kind: input, shape index: {}]   ;;  %s1325_s2 = inlined_call_operand.vmem [shape: bf16[32,32], index: 2, kind: input, shape index: {}]   ;;  %s1326_s3 = inlined_call_operand.vmem [shape: f32[1,32], index: 3, kind: input, shape index: {}]   ;;  %s1327_s4 = inlined_call_operand.hbm [shape: f32[16,32], index: 4, kind: output, shape index: {}]  }
   0x1   :  { %v1050_v0 = vld [vmem:[%s1324_s1 + $0x8] sm:$0xff]   ;;  %938 = vmatprep.subr.bf16.mxu0 %v1114_v1  ;;  %946 = vmatprep.subr.bf16.mxu1 %v1114_v1  ;;  %v1051_v2 = vld [vmem:[%s1324_s1 + $0x18] sm:$0xff]   ;;  %v1052_v3 = vld [vmem:[%s1324_s1] sm:$0xff]  }
   0x2   :  { %939 = vmatpush3.bf16.msra.mxu0 %v1050_v0  ;;  %942 = vmatprep.mubr.msk.bf16.mxu0 %vm1115_vm0, %v1114_v1  ;;  %v1053_v4 = vld [vmem:[%s1324_s1 + $0x10] sm:$0xff]   ;;  %v19_v5 = vld [vmem:[%s1323_s0] sm:$0xff]  ;;  %v20_v6 = vld [vmem:[%s1323_s0 + $0x8] sm:$0xff] }
   0x3   :  { %947 = vmatpush3.bf16.msra.mxu1 %v1051_v2  ;;  %940 = vmatprep.subr.bf16.mxu0 %v1114_v1  ;;  %v21_v7 = vpack.c.bf16 %v20_v6, %v19_v5  ;;  %v1054_v8 = vld [vmem:[%s1324_s1 + $0x28] sm:$0xff]   ;;  %v1055_v9 = vld [vmem:[%s1324_s1 + $0x38] sm:$0xff]   ;;  %v1056_v10 = vld [vmem:[%s1324_s1 + $0x20] sm:$0xff]  }
   0x4   :  { %948 = vmatprep.subr.bf16.mxu1 %v1114_v1  ;;  %950 = vmatprep.mubr.msk.bf16.mxu1 %vm1115_vm0, %v1114_v1 }
   0x6   :  { %941 = vmatpush3.bf16.msra.mxu0 %v1052_v3 }
   0x7   :  { %949 = vmatpush3.bf16.msra.mxu1 %v1053_v4  ;;  %954 = vmatprep.subr.bf16.mxu0 %v1114_v1 }
   0x8   :  { %962 = vmatprep.subr.bf16.mxu1 %v1114_v1 }
   0x9   :  { %943 = vmatmul.mubr.msk.bf16.vlgmr.msra.gmra.mxu0 %vm50_vm1, %v21_v7 }
   0xa   :  { %951 = vmatmul.mubr.msk.bf16.vlgmr.msra.gmra.mxu1 %vm50_vm1, %v21_v7  ;;  %955 = vmatpush3.bf16.msra.mxu0 %v1054_v8 }
   0xb   :  { %9 = vsyncpa [#allocation3], 0  ;;  %963 = vmatpush3.bf16.msra.mxu1 %v1055_v9  ;;  %956 = vmatprep.subr.bf16.mxu0 %v1114_v1  ;;  %v1057_v11 = vld [vmem:[%s1324_s1 + $0x30] sm:$0xff]   ;;  %s1116_s1 = smov 120   ;;  %vm261_vm2 = vcmask 64512   ;;  %v459_v40 = vlaneseq  ;;  %vm485_vm6 = vcmask 130048  }
   0xc   :  { %964 = vmatprep.subr.bf16.mxu1 %v1114_v1  ;;  %958 = vmatprep.mubr.msk.bf16.mxu0 %vm1115_vm0, %v1114_v1  ;;  %s1117_s8 = smov 112   ;;  %s1118_s13 = smov 8   ;;  %vm794_vm10 = vcmask 195584  }
   0xd   :  { %966 = vmatprep.mubr.msk.bf16.mxu1 %vm1115_vm0, %v1114_v1  ;;  %v460_v41 = vshrl.u32 %v459_v40, 7  ;;  %v463_v42 = vand.u32 127, %v459_v40  ;;  %s1119_s14 = smov 16   ;;  %s1121_s17 = smov [#allocation2]  }
   0xe   :  { %957 = vmatpush3.bf16.msra.mxu0 %v1056_v10  ;;  %s872_s18 = sshll.u32 %s1121_s17, 4  ;;  %s873_s18 = int_to_ptr.vmem [resolvable:$true] %s872_s18 }
   0xf   :  { %965 = vmatpush3.bf16.msra.mxu1 %v1057_v11  ;;  %970 = vmatprep.subr.bf16.mxu0 %v1114_v1  ;;  %v464_v43 = vshra.s32 %v460_v41, 3  ;;  %v466_v44 = vshra.s32 %v463_v42, 3  ;;  %v461_v45 = vadd.s32 8, %v460_v41  ;;  %vm469_vm4 = vcmp.le.s32.totalorder %v463_v42, %v460_v41  ;;  %s1092_s19 = scalar_lea.vmem %s873_s18, 256  ;;  %p1097_p1 = scmp.lt.s32.totalorder %s873_s18, %s873_s18 }
  0x10   :  { %976 = vmatprep.subr.bf16.mxu1 %v1114_v1  ;;  %p1093_p0 = scmp.ne.s32.totalorder %s873_s18, %s1092_s19  ;;  %p1098_p2 = scmp.lt.s32.totalorder %s1092_s19, %s1092_s19 }
  0x11   :  { %959 = vmatmul.mubr.msk.bf16.vlgmr.msra.gmra.mxu0 %vm50_vm1, %v21_v7  ;;  %vm467_vm3 = vcmp.eq.s32.totalorder %v464_v43, %v466_v44  ;;  %v465_v46 = vshra.s32 %v461_v45, 3  ;;  %vm470_vm8 = vcmp.le.s32.totalorder %v463_v42, %v461_v45 }
  0x12   :  { %967 = vmatmul.mubr.msk.bf16.vlgmr.msra.gmra.mxu1 %vm50_vm1, %v21_v7  ;;  %972 = vmatprep.mubr.msk.bf16.mxu0 %vm1115_vm0, %v1114_v1  ;;  %vm1240_vm5 = vmand %vm467_vm3, %vm469_vm4  ;;  %p1099_p3 = por %p1098_p2, %p1097_p1 }
  0x13   :  { %978 = vmatprep.mubr.msk.bf16.mxu1 %vm1115_vm0, %v1114_v1  ;;  %vm468_vm7 = vcmp.eq.s32.totalorder %v465_v46, %v466_v44 }
  0x14   :  { %vm1247_vm9 = vmand %vm468_vm7, %vm470_vm8  ;;  %p1100_p4 = pnand %p1099_p3, %p1093_p0 }
  0xc9   :  { %v88_v12 = vpop.f32.mrf.mxu0 }
  0xca   :  { %v141_v13 = vpop.f32.mrf.mxu1 }
  0xcb   :  { %v944_v14 = vpop.f32.mrf.mxu0 }
  0xcc   :  { %v952_v15 = vpop.f32.mrf.mxu1 }
  0xcd   :  { %v91_v16 = vpop.f32.mrf.mxu0 }
  0xce   :  { %v1204_v17 = vpack.c.bf16 %v91_v16, %v88_v12  ;;  %v144_v18 = vpop.f32.mrf.mxu1 }
  0xcf   :  { %v945_v19 = vpop.f32.mrf.mxu0  ;;  %v1207_v22 = vpack.c.bf16 %v144_v18, %v141_v13 }
  0xd0   :  { %v953_v20 = vpop.f32.mrf.mxu1  ;;  %259 = vrot.lane.b32.xlu0 %v1204_v17, %s1116_s1 }
  0xd1   :  { %v194_v21 = vpop.f32.mrf.mxu0 }
  0xd2   :  { %v247_v23 = vpop.f32.mrf.mxu1 }
  0xd3   :  { %v960_v24 = vpop.f32.mrf.mxu0 }
  0xd4   :  { %v968_v25 = vpop.f32.mrf.mxu1  ;;  %310 = vrot.lane.b32.xlu0 %v1207_v22, %s1116_s1 }
  0xd5   :  { %v197_v26 = vpop.f32.mrf.mxu0 }
  0xd6   :  { %v1210_v27 = vpack.c.bf16 %v197_v26, %v194_v21  ;;  %v250_v28 = vpop.f32.mrf.mxu1 }
  0xd7   :  { %v961_v29 = vpop.f32.mrf.mxu0  ;;  %v1213_v31 = vpack.c.bf16 %v250_v28, %v247_v23 }
  0xd8   :  { %v969_v30 = vpop.f32.mrf.mxu1  ;;  %360 = vrot.lane.b32.xlu1 %v1210_v27, %s1116_s1 }
  0xdc   :  { %410 = vrot.lane.b32.xlu1 %v1213_v31, %s1116_s1 }
 0x142   :  { %v260_v32 = vpop.permute.xlu0 %259 }
 0x143   :  { %v266_v33 = vsel %vm261_vm2, %v260_v32, 0 }
 0x144   :  { %971 = vmatpush3.bf16.xpose.msra.mxu0 %v266_v33 }
 0x145   :  { %982 = vmatprep.subr.bf16.mxu0 %v1114_v1 }
 0x146   :  { %v311_v34 = vpop.permute.xlu0 %310 }
 0x147   :  { %v316_v35 = vsel %vm261_vm2, %v311_v34, 0 }
 0x148   :  { %977 = vmatpush3.bf16.xpose.msra.mxu1 %v316_v35 }
 0x149   :  { %988 = vmatprep.subr.bf16.mxu1 %v1114_v1 }
 0x14a   :  { %v361_v36 = vpop.permute.xlu1 %360 }
 0x14b   :  { %v366_v37 = vsel %vm261_vm2, %v361_v36, 0  ;;  %973 = vmatmul.mubr.msk.bf16.vlgmr.msra.gmra.mxu0 %vm261_vm2, %v1204_v17 }
 0x14c   :  { %983 = vmatpush3.bf16.xpose.msra.mxu0 %v366_v37  ;;  %984 = vmatprep.mubr.msk.bf16.mxu0 %vm1115_vm0, %v1114_v1 }
 0x14d   :  { %994 = vmatprep.subr.bf16.mxu0 %v1114_v1 }
 0x14e   :  { %v411_v38 = vpop.permute.xlu1 %410 }
 0x14f   :  { %v416_v39 = vsel %vm261_vm2, %v411_v38, 0  ;;  %979 = vmatmul.mubr.msk.bf16.vlgmr.msra.gmra.mxu1 %vm261_vm2, %v1207_v22 }
 0x150   :  { %989 = vmatpush3.bf16.xpose.msra.mxu1 %v416_v39  ;;  %990 = vmatprep.mubr.msk.bf16.mxu1 %vm1115_vm0, %v1114_v1 }
 0x151   :  { %1000 = vmatprep.subr.bf16.mxu1 %v1114_v1 }
 0x153   :  { %985 = vmatmul.mubr.msk.bf16.vlgmr.msra.gmra.mxu0 %vm261_vm2, %v1210_v27 }
 0x154   :  { %996 = vmatprep.mubr.msk.bf16.mxu0 %vm1115_vm0, %v1114_v1 }
 0x157   :  { %991 = vmatmul.mubr.msk.bf16.vlgmr.msra.gmra.mxu1 %vm261_vm2, %v1213_v31 }
 0x158   :  { %1002 = vmatprep.mubr.msk.bf16.mxu1 %vm1115_vm0, %v1114_v1 }
 0x20b   :  { %v302_v48 = vpop.f32.mrf.mxu0 }
 0x20c   :  { %v477_v49 = vsel %vm1240_vm5, %v302_v48, -1e+30 }
 0x20d   :  { %v974_v50 = vpop.f32.mrf.mxu0  ;;  %v486_v51 = vsel %vm485_vm6, %v477_v49, -inf }
 0x20e   :  { %487 = vmax.xlane.f32.xlu0 %v486_v51 }
 0x20f   :  { %v305_v53 = vpop.f32.mrf.mxu0  ;;  %v352_v54 = vpop.f32.mrf.mxu1 }
 0x210   :  { %v478_v55 = vsel %vm1247_vm9, %v305_v53, -1e+30  ;;  %v479_v56 = vsel %vm1240_vm5, %v352_v54, -1e+30 }
 0x211   :  { %v975_v57 = vpop.f32.mrf.mxu0  ;;  %v980_v58 = vpop.f32.mrf.mxu1  ;;  %v492_v59 = vsel %vm485_vm6, %v479_v56, -inf  ;;  %v489_v60 = vsel %vm485_vm6, %v478_v55, -inf }
 0x212   :  { %493 = vmax.xlane.f32.xlu0 %v492_v59  ;;  %490 = vmax.xlane.f32.xlu1 %v489_v60 }
 0x213   :  { %v355_v61 = vpop.f32.mrf.mxu1  ;;  %v402_v62 = vpop.f32.mrf.mxu0 }
 0x214   :  { %v480_v63 = vsel %vm1247_vm9, %v355_v61, -1e+30  ;;  %v481_v0 = vsel %vm1240_vm5, %v402_v62, -1e+30 }
 0x215   :  { %v981_v2 = vpop.f32.mrf.mxu1  ;;  %v986_v3 = vpop.f32.mrf.mxu0  ;;  %v495_v4 = vsel %vm485_vm6, %v480_v63, -inf  ;;  %v498_v5 = vsel %vm485_vm6, %v481_v0, -inf }
 0x216   :  { %496 = vmax.xlane.f32.xlu0 %v495_v4  ;;  %499 = vmax.xlane.f32.xlu1 %v498_v5 }
 0x217   :  { %v405_v6 = vpop.f32.mrf.mxu0  ;;  %v452_v7 = vpop.f32.mrf.mxu1 }
 0x218   :  { %v482_v8 = vsel %vm1247_vm9, %v405_v6, -1e+30  ;;  %v483_v9 = vsel %vm1240_vm5, %v452_v7, -1e+30 }
 0x219   :  { %v987_v10 = vpop.f32.mrf.mxu0  ;;  %v992_v11 = vpop.f32.mrf.mxu1  ;;  %v504_v12 = vsel %vm485_vm6, %v483_v9, -inf  ;;  %v501_v13 = vsel %vm485_vm6, %v482_v8, -inf }
 0x21a   :  { %505 = vmax.xlane.f32.xlu1 %v504_v12  ;;  %502 = vmax.xlane.f32.xlu0 %v501_v13 }
 0x21b   :  { %v455_v14 = vpop.f32.mrf.mxu1 }
 0x21c   :  { %v484_v15 = vsel %vm1247_vm9, %v455_v14, -1e+30 }
 0x21d   :  { %v993_v16 = vpop.f32.mrf.mxu1  ;;  %v507_v18 = vsel %vm485_vm6, %v484_v15, -inf }
 0x21e   :  { %508 = vmax.xlane.f32.xlu0 %v507_v18 }
 0x22b   :  { %578 = vrot.lane.b32.xlu1 %v1204_v17, %s1117_s8 }
 0x297   :  { %v488_v19 = vpop.xlane.xlu0 %487 }
 0x298   :  { %v510_v20 = vsub.f32 %v477_v49, %v488_v19 }
 0x29a   :  { %v518_v21 = vmul.f32 1.442695, %v510_v20 }
 0x29b   :  { %v494_v23 = vpop.xlane.xlu0 %493  ;;  %v491_v24 = vpop.xlane.xlu1 %490 }
 0x29c   :  { %1060 = vpow2.f32 %v518_v21  ;;  %v512_v25 = vsub.f32 %v479_v56, %v494_v23  ;;  %v511_v26 = vsub.f32 %v478_v55, %v491_v24 }
 0x29e   :  { %v522_v28 = vmul.f32 1.442695, %v512_v25  ;;  %v520_v29 = vmul.f32 1.442695, %v511_v26 }
 0x29f   :  { %v497_v30 = vpop.xlane.xlu0 %496  ;;  %v500_v32 = vpop.xlane.xlu1 %499 }
 0x2a0   :  { %1062 = vpow2.f32 %v522_v28  ;;  %v513_v33 = vsub.f32 %v480_v63, %v497_v30  ;;  %v514_v34 = vsub.f32 %v481_v0, %v500_v32 }
 0x2a1   :  { %1064 = vpow2.f32 %v520_v29 }
 0x2a2   :  { %v524_v35 = vmul.f32 1.442695, %v513_v33  ;;  %v526_v36 = vmul.f32 1.442695, %v514_v34  ;;  %v1058_v34 = vld [vmem:[%s1325_s2 + $0x8] sm:$0xff]  }
 0x2a3   :  { %v506_v37 = vpop.xlane.xlu1 %505  ;;  %v503_v17 = vpop.xlane.xlu0 %502 }
 0x2a4   :  { %1066 = vpow2.f32 %v524_v35  ;;  %v516_v38 = vsub.f32 %v483_v9, %v506_v37  ;;  %v515_v39 = vsub.f32 %v482_v8, %v503_v17  ;;  %v1059_v17 = vld [vmem:[%s1325_s2] sm:$0xff]   ;;  %s1120_s2 = smov 24  }
 0x2a5   :  { %1068 = vpow2.f32 %v526_v36 }
 0x2a6   :  { %v530_v40 = vmul.f32 1.442695, %v516_v38  ;;  %v528_v41 = vmul.f32 1.442695, %v515_v39 }
 0x2a7   :  { %v579_v42 = vpop.permute.xlu1 %578  ;;  %v509_v43 = vpop.xlane.xlu0 %508 }
 0x2a8   :  { %1070 = vpow2.f32 %v530_v40  ;;  %v517_v44 = vsub.f32 %v484_v15, %v509_v43  ;;  %995 = vmatpush3.bf16.msra.mxu0 %v579_v42 }
 0x2a9   :  { %v1061_v45 = vpop.eup %1060  ;;  %1072 = vpow2.f32 %v528_v41  ;;  %1006 = vmatprep.subr.bf16.mxu0 %v1114_v1 }
 0x2aa   :  { %v532_v46 = vmul.f32 1.442695, %v517_v44  ;;  %v534_v47 = vsel %vm485_vm6, %v1061_v45, 0.0 }
 0x2ab   :  { %535 = vadd.xlane.f32.xlu1 %v534_v47 }
 0x2ac   :  { %1074 = vpow2.f32 %v532_v46 }
 0x2ad   :  { %v1063_v48 = vpop.eup %1062 }
 0x2ae   :  { %v1065_v49 = vpop.eup %1064  ;;  %v540_v50 = vsel %vm485_vm6, %v1063_v48, 0.0 }
 0x2af   :  { %541 = vadd.xlane.f32.xlu1 %v540_v50  ;;  %v537_v51 = vsel %vm485_vm6, %v1065_v49, 0.0 }
 0x2b0   :  { %538 = vadd.xlane.f32.xlu0 %v537_v51 }
 0x2b1   :  { %v1067_v52 = vpop.eup %1066 }
 0x2b2   :  { %v1069_v53 = vpop.eup %1068  ;;  %v543_v54 = vsel %vm485_vm6, %v1067_v52, 0.0 }
 0x2b3   :  { %v546_v55 = vsel %vm485_vm6, %v1069_v53, 0.0 }
 0x2b4   :  { %547 = vadd.xlane.f32.xlu1 %v546_v55  ;;  %544 = vadd.xlane.f32.xlu0 %v543_v54 }
 0x2b5   :  { %v1071_v56 = vpop.eup %1070 }
 0x2b6   :  { %v1073_v57 = vpop.eup %1072  ;;  %v552_v58 = vsel %vm485_vm6, %v1071_v56, 0.0 }
 0x2b7   :  { %v549_v59 = vsel %vm485_vm6, %v1073_v57, 0.0 }
 0x2b8   :  { %553 = vadd.xlane.f32.xlu1 %v552_v58  ;;  %550 = vadd.xlane.f32.xlu0 %v549_v59 }
 0x2b9   :  { %v1075_v60 = vpop.eup %1074 }
 0x2ba   :  { %v555_v61 = vsel %vm485_vm6, %v1075_v60, 0.0 }
 0x2bc   :  { %556 = vadd.xlane.f32.xlu0 %v555_v61 }
 0x2c9   :  { %672 = vrot.lane.b32.xlu1 %v1210_v27, %s1117_s8 }
 0x2cd   :  { %719 = vrot.lane.b32.xlu1 %v1213_v31, %s1117_s8 }
 0x2d2   :  { %625 = vrot.lane.b32.xlu0 %v1207_v22, %s1117_s8 }
 0x334   :  { %v536_v62 = vpop.xlane.xlu1 %535 }
 0x335   :  { %1076 = vrcp.f32 %v536_v62 }
 0x338   :  { %v542_v63 = vpop.xlane.xlu1 %541 }
 0x339   :  { %v539_v0 = vpop.xlane.xlu0 %538 }
 0x33a   :  { %1078 = vrcp.f32 %v539_v0 }
 0x33b   :  { %1080 = vrcp.f32 %v542_v63 }
 0x33d   :  { %v548_v2 = vpop.xlane.xlu1 %547  ;;  %v545_v3 = vpop.xlane.xlu0 %544 }
 0x33e   :  { %1082 = vrcp.f32 %v545_v3  ;;  %v903_v3 = vld [vmem:[%s1326_s3] ss:$0 sm:$0xff] }
 0x33f   :  { %1084 = vrcp.f32 %v548_v2 }
 0x341   :  { %v554_v4 = vpop.xlane.xlu1 %553  ;;  %v551_v5 = vpop.xlane.xlu0 %550 }
 0x342   :  { %1086 = vrcp.f32 %v551_v5  ;;  %v1077_v27 = vpop.eup %1076 }
 0x343   :  { %1088 = vrcp.f32 %v554_v4  ;;  %v566_v7 = vmul.f32 %v1077_v27, %v1061_v45 }
 0x345   :  { %v557_v6 = vpop.xlane.xlu0 %556  ;;  %v673_v11 = vpop.permute.xlu1 %672 }
 0x346   :  { %1090 = vrcp.f32 %v557_v6 }
 0x347   :  { %v1079_v31 = vpop.eup %1078 }
 0x348   :  { %v567_v22 = vmul.f32 %v1079_v31, %v1065_v49  ;;  %v1081_v9 = vpop.eup %1080 }
 0x349   :  { %v626_v8 = vpop.permute.xlu0 %625  ;;  %v568_v13 = vmul.f32 %v1081_v9, %v1063_v48  ;;  %v720_v20 = vpop.permute.xlu1 %719 }
 0x34a   :  { %1001 = vmatpush3.bf16.msra.mxu1 %v626_v8  ;;  %v574_v10 = vpack.c.bf16 %v567_v22, %v566_v7 }
 0x34b   :  { %1012 = vmatprep.subr.bf16.mxu1 %v1114_v1  ;;  %v1083_v12 = vpop.eup %1082 }
 0x34c   :  { %997 = vmatmul.mubr.msk.bf16.vlgmr.msra.gmra.mxu0 %vm485_vm6, %v574_v10  ;;  %v569_v14 = vmul.f32 %v1083_v12, %v1067_v52  ;;  %v1085_v15 = vpop.eup %1084 }
 0x34d   :  { %1007 = vmatpush3.bf16.msra.mxu0 %v673_v11  ;;  %1008 = vmatprep.mubr.msk.bf16.mxu0 %vm1115_vm0, %v1114_v1  ;;  %v570_v21 = vmul.f32 %v1085_v15, %v1069_v53 }
 0x34e   :  { %1018 = vmatprep.subr.bf16.mxu0 %v1114_v1  ;;  %v575_v16 = vpack.c.bf16 %v569_v14, %v568_v13 }
 0x34f   :  { %v1087_v18 = vpop.eup %1086 }
 0x350   :  { %v1089_v19 = vpop.eup %1088  ;;  %1003 = vmatmul.mubr.msk.bf16.vlgmr.msra.gmra.mxu1 %vm485_vm6, %v575_v16  ;;  %v571_v23 = vmul.f32 %v1087_v18, %v1073_v57 }
 0x351   :  { %1013 = vmatpush3.bf16.msra.mxu1 %v720_v20  ;;  %1014 = vmatprep.mubr.msk.bf16.mxu1 %vm1115_vm0, %v1114_v1  ;;  %v572_v26 = vmul.f32 %v1089_v19, %v1071_v56 }
 0x352   :  { %v576_v25 = vpack.c.bf16 %v571_v23, %v570_v21 }
 0x353   :  { %v1091_v24 = vpop.eup %1090 }
 0x354   :  { %v573_v28 = vmul.f32 %v1091_v24, %v1075_v60  ;;  %1009 = vmatmul.mubr.msk.bf16.vlgmr.msra.gmra.mxu0 %vm485_vm6, %v576_v25 }
 0x355   :  { %1022 = vmatprep.mubr.msk.bf16.mxu0 %vm1115_vm0, %v1114_v1  ;;  %1019 = vmatpush3.bf16.msra.mxu0 %v1058_v34 }
 0x356   :  { %v577_v29 = vpack.c.bf16 %v573_v28, %v572_v26  ;;  %1020 = vmatprep.subr.bf16.mxu0 %v1114_v1 }
 0x358   :  { %1015 = vmatmul.mubr.msk.bf16.vlgmr.msra.gmra.mxu1 %vm485_vm6, %v577_v29 }
 0x359   :  { %1021 = vmatpush3.bf16.msra.mxu0 %v1059_v17 }
 0x40c   :  { %v618_v30 = vpop.f32.mrf.mxu0 }
 0x40e   :  { %v998_v32 = vpop.f32.mrf.mxu0 }
 0x410   :  { %v621_v33 = vpop.f32.mrf.mxu0  ;;  %v665_v35 = vpop.f32.mrf.mxu1 }
 0x412   :  { %v999_v36 = vpop.f32.mrf.mxu0  ;;  %v1004_v37 = vpop.f32.mrf.mxu1 }
 0x414   :  { %v668_v38 = vpop.f32.mrf.mxu1  ;;  %v712_v39 = vpop.f32.mrf.mxu0 }
 0x415   :  { %v1035_v40 = vpack.i.bf16 %v668_v38, %v665_v35 }
 0x416   :  { %v1005_v41 = vpop.f32.mrf.mxu1  ;;  %v1010_v42 = vpop.f32.mrf.mxu0 }
 0x417   :  { %1036 = vrot.lane.b32.xlu0 %v1035_v40, %s1118_s13 }
 0x418   :  { %v715_v43 = vpop.f32.mrf.mxu0  ;;  %v759_v44 = vpop.f32.mrf.mxu1 }
 0x419   :  { %v1040_v45 = vpack.i.bf16 %v715_v43, %v712_v39 }
 0x41a   :  { %v1011_v46 = vpop.f32.mrf.mxu0  ;;  %v1016_v47 = vpop.f32.mrf.mxu1 }
 0x41b   :  { %1041 = vrot.lane.b32.xlu1 %v1040_v45, %s1119_s14 }
 0x41c   :  { %v762_v1 = vpop.f32.mrf.mxu1 }
 0x41d   :  { %v1045_v48 = vpack.i.bf16 %v762_v1, %v759_v44 }
 0x41e   :  { %v1017_v49 = vpop.f32.mrf.mxu1 }
 0x41f   :  { %1046 = vrot.lane.b32.xlu0 %v1045_v48, %s1120_s2 }
 0x489   :  { %v1037_v50 = vpop.permute.xlu0 %1036 }
 0x48a   :  { %v1039_v52 = vunpack.i.h.bf16 %v1037_v50  ;;  %v1038_v53 = vunpack.i.l.bf16 %v1037_v50 }
 0x48c   :  { %v790_v57 = vsel %vm261_vm2, %v618_v30, %v1038_v53  ;;  %v791_v58 = vsel %vm261_vm2, %v621_v33, %v1039_v52 }
 0x48d   :  { %v1042_v51 = vpop.permute.xlu1 %1041 }
 0x48e   :  { %v1044_v54 = vunpack.i.h.bf16 %v1042_v51  ;;  %v1043_v55 = vunpack.i.l.bf16 %v1042_v51 }
 0x490   :  { %v793_v61 = vsel %vm485_vm6, %v791_v58, %v1044_v54  ;;  %v792_v62 = vsel %vm485_vm6, %v790_v57, %v1043_v55 }
 0x491   :  { %v1047_v56 = vpop.permute.xlu0 %1046 }
 0x492   :  { %v1049_v59 = vunpack.i.h.bf16 %v1047_v56  ;;  %v1048_v60 = vunpack.i.l.bf16 %v1047_v56 }
 0x494   :  { %v795_v63 = vsel %vm794_vm10, %v792_v62, %v1048_v60  ;;  %v796_v0 = vsel %vm794_vm10, %v793_v61, %v1049_v59 }
 0x495   :  { %v797_v2 = vpack.c.bf16 %v796_v0, %v795_v63 }
 0x497   :  { %1023 = vmatmul.mubr.msk.bf16.vlgmr.msra.gmra.mxu0 %vm50_vm1, %v797_v2 }
 0x557   :  { %v858_v4 = vpop.f32.mrf.mxu0 }
 0x558   :  { %v859_v5 = vadd.f32 %v903_v3, %v858_v4 }
 0x559   :  { %v1024_v27 = vpop.f32.mrf.mxu0 }
 0x55a   :  { %865 = vst.msk [vmem:[#allocation2] sm:$0xff] %vm50_vm1, %v859_v5 }
 0x55b   :  { %v861_v6 = vpop.f32.mrf.mxu0 }
 0x55c   :  { %v862_v31 = vadd.f32 %v903_v3, %v861_v6 }
 0x55d   :  { %v1025_v7 = vpop.f32.mrf.mxu0 }
 0x55e   :  { %866 = vst.msk [vmem:[#allocation2 + $0x8] sm:$0xff] %vm50_vm1, %v862_v31 }
 0x55f   :  { %1103 = shalt.err (!%p1100_p4)
}
 0x560   :  { %s1122_s3 = smov 128  }
 0x561   :  { %878 = dma.vmem_to_hbm [thread:$0]  %s873_s18, 256, %s1327_s4, [#allocation3], %s1122_s3, %s1122_s3, %s1118_s13  }
 0x562   :  { %1112 = dma.done.wait [#allocation3], 256  }
 0x563   :  { %1113 = vsyncadd [#allocation3], 4294967040 }
 0x564   :  { %882 = vsyncpa [#allocation3], 1 }

</bundles_post_ra>
